<compile_context>
chip_gen: v7x
topology: tpu7x:2x2x1
jax: 0.10.0
libtpu: 0.0.40
codegen_flags: <defaults>
</compile_context>

<pallas_src>
import math

import numpy as np
import jax
import jax.numpy as jnp
from jax.experimental import pallas as pl
from jax.experimental.pallas import tpu as pltpu


_SINGLE_BLOCK_MAX = 512   # below this: grid-free; at/above: >=2-step parallel grid
_MAX_BLOCK_B = 8192       # keeps double-buffered tiles far under 32 MiB scoped VMEM


def _round_up(x, m):
    return ((x + m - 1) // m) * m


def _gelu_exact(x):
    """Exact (erf-form) GELU, matching PyTorch nn.GELU() default.

    erf via Abramowitz & Stegun 7.1.26 (max abs error ~1.5e-7); only
    exp / mul / add / where, all of which lower cleanly in Mosaic.
    """
    z = x * 0.7071067811865476          # x / sqrt(2)
    az = jnp.abs(z)
    t = 1.0 / (1.0 + 0.3275911 * az)
    poly = ((((1.061405429 * t - 1.453152027) * t + 1.421413741) * t
             - 0.284496736) * t + 0.254829592) * t
    erf_abs = 1.0 - poly * jnp.exp(-az * az)
    erf_z = jnp.where(z >= 0.0, erf_abs, -erf_abs)
    return 0.5 * x * (1.0 + erf_z)


def _time_emb_kernel(x_ref, freqs_ref, phase_ref, w1_ref, b1_ref, w2_ref,
                     b2_ref, o_ref):
    """Fused SinusoidalPosEmb + Linear + GELU + Linear.

    x_ref:     (TB, 1)      f32 timesteps
    freqs_ref: (1, PD)      f32 [f_0..f_{h-1}, f_0..f_{h-1}, 0...]  (PD = padded dim)
    phase_ref: (1, PD)      f32 [0..0, pi/2..pi/2, 0...]   (sin(a+pi/2) == cos(a))
    w1_ref:    (PD, H)      bf16, zero rows in the padded region
    b1_ref:    (1, H)       f32
    w2_ref:    (H, H)       bf16
    b2_ref:    (1, H)       f32
    o_ref:     (TB, H)      out dtype (f32 or bf16)
    """
    x = x_ref[...]                                            # (TB, 1) f32
    # phase-offset sin over the whole tile == concat(sin(arg), cos(arg));
    # padded lanes: sin(0) == 0 and the matching w1 rows are zero.
    emb = jnp.sin(x * freqs_ref[...] + phase_ref[...])        # (TB, PD) f32

    # bf16 operands, f32 accumulation on the MXU.
    h = jnp.dot(emb.astype(jnp.bfloat16), w1_ref[...],
                preferred_element_type=jnp.float32) + b1_ref[...]
    h = _gelu_exact(h)

    out = jnp.dot(h.astype(jnp.bfloat16), w2_ref[...],
                  preferred_element_type=jnp.float32) + b2_ref[...]
    o_ref[...] = out.astype(o_ref.dtype)


def time_embedding(timesteps, w1, b1, w2, b2, *, block_b=4096,
                   out_dtype=jnp.float32):
    """timesteps: (B,) float -> (B, hidden) fused diffusion time embedding."""
    dim, hidden = w1.shape
    assert dim % 2 == 0 and dim >= 4, "embedding dim must be even and >= 4"
    assert w2.shape == (hidden, hidden)
    b = timesteps.shape[0]
    block_b = max(8, min(int(block_b), _MAX_BLOCK_B))

    x2d = timesteps.astype(jnp.float32).reshape(b, 1)

    # ---- host-side constant / weight prep -------------------------------
    half = dim // 2
    scale = math.log(10000.0) / (half - 1)
    freqs = np.exp(-scale * np.arange(half, dtype=np.float64)).astype(np.float32)

    pad_dim = _round_up(dim, 128)                     # K=128-aligned MXU feed
    freqs_tbl = np.zeros((1, pad_dim), np.float32)
    phase_tbl = np.zeros((1, pad_dim), np.float32)
    freqs_tbl[0, :half] = freqs
    freqs_tbl[0, half:dim] = freqs
    phase_tbl[0, half:dim] = np.pi / 2.0
    freqs2 = jnp.asarray(freqs_tbl)
    phase = jnp.asarray(phase_tbl)

    # zero-padded rows -> padded lanes contribute exactly nothing.
    w1p = jnp.pad(w1.astype(jnp.float32), ((0, pad_dim - dim), (0, 0)))
    w1_bf = w1p.astype(jnp.bfloat16)
    w2_bf = w2.astype(jnp.float32).astype(jnp.bfloat16)
    b1_2d = b1.astype(jnp.float32).reshape(1, hidden)
    b2_2d = b2.astype(jnp.float32).reshape(1, hidden)

    table_args = (freqs2, phase, w1_bf, b1_2d, w2_bf, b2_2d)

    # ---- small batch: grid-free single block (tiny VMEM footprint) ------
    if b < _SINGLE_BLOCK_MAX:
        vmem = pl.BlockSpec(memory_space=pltpu.MemorySpace.VMEM)
        return pl.pallas_call(
            _time_emb_kernel,
            out_shape=jax.ShapeDtypeStruct((b, hidden), out_dtype),
            in_specs=[vmem] * (1 + len(table_args)),
            out_specs=vmem,
        )(x2d, *table_args)

    # ---- medium/large batch: >=2-step "parallel" grid (both TCs on v7x) --
    grid_n = max(2, pl.cdiv(b, block_b))
    block = _round_up(pl.cdiv(b, grid_n), 8)
    padded_b = block * grid_n
    if padded_b != b:
        x2d = jnp.pad(x2d, ((0, padded_b - b), (0, 0)))   # ragged last tile

    bcast = lambda shape: pl.BlockSpec(shape, lambda i: (0, 0))
    out = pl.pallas_call(
        _time_emb_kernel,
        out_shape=jax.ShapeDtypeStruct((padded_b, hidden), out_dtype),
        grid_spec=pltpu.PrefetchScalarGridSpec(
            num_scalar_prefetch=0,
            grid=(grid_n,),
            in_specs=[
                pl.BlockSpec((block, 1), lambda i: (i, 0)),
                bcast((1, pad_dim)),
                bcast((1, pad_dim)),
                bcast((pad_dim, hidden)),
                bcast((1, hidden)),
                bcast((hidden, hidden)),
                bcast((1, hidden)),
            ],
            out_specs=pl.BlockSpec((block, hidden), lambda i: (i, 0)),
        ),
        compiler_params=pltpu.CompilerParams(
            dimension_semantics=("parallel",)),
    )(x2d, *table_args)
    return out[:b] if padded_b != b else out


def _reference(timesteps, w1, b1, w2, b2):
    """Pure-JAX f32 reference of SinusoidalPosEmb + Linear + exact GELU + Linear."""
    dim, hidden = w1.shape
    half = dim // 2
    scale = math.log(10000.0) / (half - 1)
    freqs = jnp.exp(-scale * jnp.arange(half, dtype=jnp.float32))
    arg = timesteps[:, None].astype(jnp.float32) * freqs[None, :]
    emb = jnp.concatenate([jnp.sin(arg), jnp.cos(arg)], axis=-1)
    h = jnp.dot(emb, w1, preferred_element_type=jnp.float32,
                precision=jax.lax.Precision.HIGHEST) + b1.reshape(1, hidden)
    h = jax.nn.gelu(h, approximate=False)           # PyTorch nn.GELU() default
    return jnp.dot(h, w2, preferred_element_type=jnp.float32,
                   precision=jax.lax.Precision.HIGHEST) + b2.reshape(1, hidden)


if __name__ == "__main__":
    key = jax.random.PRNGKey(0)
    k_t, k_w1, k_b1, k_w2, k_b2, k_t2 = jax.random.split(key, 6)

    hidden = 128               # config.hidden_size
    dim = hidden // 4          # SinusoidalPosEmb(dim=hidden // 4) -> 32
    batch = 8

    timesteps = jax.random.uniform(k_t, (batch,), jnp.float32, 0.0, 1000.0)
    w1 = jax.random.normal(k_w1, (dim, hidden), jnp.float32) / math.sqrt(dim)
    b1 = jax.random.normal(k_b1, (hidden,), jnp.float32) * 0.02
    w2 = jax.random.normal(k_w2, (hidden, hidden), jnp.float32) / math.sqrt(hidden)
    b2 = jax.random.normal(k_b2, (hidden,), jnp.float32) * 0.02

    # Tolerance sized for bf16 MXU operands (~2^-8 relative per operand) with
    # f32 accumulation; estimated worst-case abs output error is ~1e-2 here.
    tol = dict(atol=3e-2, rtol=3e-2)

    # Small batch: grid-free single-block path.
    out = jax.block_until_ready(time_embedding(timesteps, w1, b1, w2, b2))
    ref = _reference(timesteps, w1, b1, w2, b2)
    assert out.shape == (batch, hidden) and out.dtype == jnp.float32, (out.shape, out.dtype)
    assert jnp.allclose(out, ref, **tol), float(jnp.max(jnp.abs(out - ref)))

    # Larger, ragged batch: >=2-step "parallel" grid (both TCs on v7x) with
    # internal padding of the last tile (no caller-side divisibility needed).
    big_b = 2050
    t_big = jax.random.uniform(k_t2, (big_b,), jnp.float32, 0.0, 1000.0)
    out_big = jax.block_until_ready(time_embedding(t_big, w1, b1, w2, b2))
    ref_big = _reference(t_big, w1, b1, w2, b2)
    assert out_big.shape == (big_b, hidden), out_big.shape
    assert jnp.allclose(out_big, ref_big, **tol), float(jnp.max(jnp.abs(out_big - ref_big)))

    # bf16 output (for a bf16 downstream trunk): halves HBM write-back bytes.
    out_bf16 = jax.block_until_ready(
        time_embedding(t_big, w1, b1, w2, b2, out_dtype=jnp.bfloat16))
    assert out_bf16.dtype == jnp.bfloat16
    assert jnp.allclose(out_bf16.astype(jnp.float32), ref_big, atol=7.5e-2, rtol=7.5e-2)

    print("KERNEL_OK")
</pallas_src>

<mosaic_0001>
module attributes {stable_mosaic.version = 11 : i64} {
  func.func @_time_emb_kernel(%arg0: memref<8x1xf32, #tpu.memory_space<vmem>>, %arg1: memref<1x128xf32, #tpu.memory_space<vmem>>, %arg2: memref<1x128xf32, #tpu.memory_space<vmem>>, %arg3: memref<128x128xbf16, #tpu.memory_space<vmem>>, %arg4: memref<1x128xf32, #tpu.memory_space<vmem>>, %arg5: memref<128x128xbf16, #tpu.memory_space<vmem>>, %arg6: memref<1x128xf32, #tpu.memory_space<vmem>>, %arg7: memref<8x128xf32, #tpu.memory_space<vmem>>) attributes {dimension_semantics = [], scalar_prefetch = 0 : i64, scratch_operands = 0 : i64, tpu.core_type = #tpu.core_type<tc>} {
    %c0 = arith.constant 0 : index
    %c0_0 = arith.constant 0 : index
    %0 = vector.load %arg0[%c0, %c0_0] : memref<8x1xf32, #tpu.memory_space<vmem>>, vector<8x1xf32>
    %c0_1 = arith.constant 0 : index
    %c0_2 = arith.constant 0 : index
    %1 = vector.load %arg1[%c0_1, %c0_2] : memref<1x128xf32, #tpu.memory_space<vmem>>, vector<1x128xf32>
    %2 = vector.broadcast %0 : vector<8x1xf32> to vector<8x128xf32>
    %3 = vector.broadcast %1 : vector<1x128xf32> to vector<8x128xf32>
    %4 = arith.mulf %2, %3 : vector<8x128xf32>
    %c0_3 = arith.constant 0 : index
    %c0_4 = arith.constant 0 : index
    %5 = vector.load %arg2[%c0_3, %c0_4] : memref<1x128xf32, #tpu.memory_space<vmem>>, vector<1x128xf32>
    %6 = vector.broadcast %5 : vector<1x128xf32> to vector<8x128xf32>
    %7 = arith.addf %4, %6 : vector<8x128xf32>
    %8 = math.sin %7 : vector<8x128xf32>
    %9 = arith.truncf %8 : vector<8x128xf32> to vector<8x128xbf16>
    %c0_5 = arith.constant 0 : index
    %c0_6 = arith.constant 0 : index
    %10 = vector.load %arg3[%c0_5, %c0_6] : memref<128x128xbf16, #tpu.memory_space<vmem>>, vector<128x128xbf16>
    %cst = arith.constant dense<0.000000e+00> : vector<8x128xf32>
    %11 = tpu.matmul %9, %10, %cst {dimension_numbers = #tpu.dot_dimension_numbers<[1], [0], [0], [1], [0, 0, 1, 1], [], []>} : vector<8x128xbf16>, vector<128x128xbf16>, vector<8x128xf32> -> vector<8x128xf32>
    %c0_7 = arith.constant 0 : index
    %c0_8 = arith.constant 0 : index
    %12 = vector.load %arg4[%c0_7, %c0_8] : memref<1x128xf32, #tpu.memory_space<vmem>>, vector<1x128xf32>
    %13 = vector.broadcast %12 : vector<1x128xf32> to vector<8x128xf32>
    %14 = arith.addf %11, %13 : vector<8x128xf32>
    %cst_9 = arith.constant 0.707106769 : f32
    %15 = vector.broadcast %cst_9 : f32 to vector<8x128xf32>
    %16 = arith.mulf %14, %15 : vector<8x128xf32>
    %17 = math.absf %16 : vector<8x128xf32>
    %cst_10 = arith.constant 0.327591091 : f32
    %18 = vector.broadcast %cst_10 : f32 to vector<8x128xf32>
    %19 = arith.mulf %18, %17 : vector<8x128xf32>
    %cst_11 = arith.constant 1.000000e+00 : f32
    %20 = vector.broadcast %cst_11 : f32 to vector<8x128xf32>
    %21 = arith.addf %20, %19 : vector<8x128xf32>
    %cst_12 = arith.constant 1.000000e+00 : f32
    %22 = vector.broadcast %cst_12 : f32 to vector<8x128xf32>
    %23 = arith.divf %22, %21 : vector<8x128xf32>
    %cst_13 = arith.constant 1.06140542 : f32
    %24 = vector.broadcast %cst_13 : f32 to vector<8x128xf32>
    %25 = arith.mulf %24, %23 : vector<8x128xf32>
    %cst_14 = arith.constant 1.45315206 : f32
    %26 = vector.broadcast %cst_14 : f32 to vector<8x128xf32>
    %27 = arith.subf %25, %26 : vector<8x128xf32>
    %28 = arith.mulf %27, %23 : vector<8x128xf32>
    %cst_15 = arith.constant 1.42141378 : f32
    %29 = vector.broadcast %cst_15 : f32 to vector<8x128xf32>
    %30 = arith.addf %28, %29 : vector<8x128xf32>
    %31 = arith.mulf %30, %23 : vector<8x128xf32>
    %cst_16 = arith.constant 0.284496725 : f32
    %32 = vector.broadcast %cst_16 : f32 to vector<8x128xf32>
    %33 = arith.subf %31, %32 : vector<8x128xf32>
    %34 = arith.mulf %33, %23 : vector<8x128xf32>
    %cst_17 = arith.constant 0.254829586 : f32
    %35 = vector.broadcast %cst_17 : f32 to vector<8x128xf32>
    %36 = arith.addf %34, %35 : vector<8x128xf32>
    %37 = arith.mulf %36, %23 : vector<8x128xf32>
    %cst_18 = arith.constant 0.000000e+00 : f32
    %38 = vector.broadcast %cst_18 : f32 to vector<8x128xf32>
    %39 = arith.subf %38, %17 : vector<8x128xf32>
    %40 = arith.mulf %39, %17 : vector<8x128xf32>
    %41 = math.exp %40 : vector<8x128xf32>
    %42 = arith.mulf %37, %41 : vector<8x128xf32>
    %cst_19 = arith.constant 1.000000e+00 : f32
    %43 = vector.broadcast %cst_19 : f32 to vector<8x128xf32>
    %44 = arith.subf %43, %42 : vector<8x128xf32>
    %cst_20 = arith.constant 0.000000e+00 : f32
    %45 = vector.broadcast %cst_20 : f32 to vector<8x128xf32>
    %46 = arith.cmpf oge, %16, %45 : vector<8x128xf32>
    %cst_21 = arith.constant 0.000000e+00 : f32
    %47 = vector.broadcast %cst_21 : f32 to vector<8x128xf32>
    %48 = arith.subf %47, %44 : vector<8x128xf32>
    %49 = arith.select %46, %44, %48 : vector<8x128xi1>, vector<8x128xf32>
    %cst_22 = arith.constant 5.000000e-01 : f32
    %50 = vector.broadcast %cst_22 : f32 to vector<8x128xf32>
    %51 = arith.mulf %50, %14 : vector<8x128xf32>
    %cst_23 = arith.constant 1.000000e+00 : f32
    %52 = vector.broadcast %cst_23 : f32 to vector<8x128xf32>
    %53 = arith.addf %52, %49 : vector<8x128xf32>
    %54 = arith.mulf %51, %53 : vector<8x128xf32>
    %55 = arith.truncf %54 : vector<8x128xf32> to vector<8x128xbf16>
    %c0_24 = arith.constant 0 : index
    %c0_25 = arith.constant 0 : index
    %56 = vector.load %arg5[%c0_24, %c0_25] : memref<128x128xbf16, #tpu.memory_space<vmem>>, vector<128x128xbf16>
    %cst_26 = arith.constant dense<0.000000e+00> : vector<8x128xf32>
    %57 = tpu.matmul %55, %56, %cst_26 {dimension_numbers = #tpu.dot_dimension_numbers<[1], [0], [0], [1], [0, 0, 1, 1], [], []>} : vector<8x128xbf16>, vector<128x128xbf16>, vector<8x128xf32> -> vector<8x128xf32>
    %c0_27 = arith.constant 0 : index
    %c0_28 = arith.constant 0 : index
    %58 = vector.load %arg6[%c0_27, %c0_28] : memref<1x128xf32, #tpu.memory_space<vmem>>, vector<1x128xf32>
    %59 = vector.broadcast %58 : vector<1x128xf32> to vector<8x128xf32>
    %60 = arith.addf %57, %59 : vector<8x128xf32>
    %c0_29 = arith.constant 0 : index
    %c0_30 = arith.constant 0 : index
    %61 = vector.load %arg7[%c0_29, %c0_30] : memref<8x128xf32, #tpu.memory_space<vmem>>, vector<8x128xf32>
    tpu.vector_store %arg7[%c0_29, %c0_30], %60 {strides = array<i32>} : memref<8x128xf32, #tpu.memory_space<vmem>>, vector<8x128xf32>,
    return
  }
}

</mosaic_0001>

<bundles_post_ra>
// kernel: tpu_custom_call.1
= control target key start
LH: loop header
LB: loop body
LE: loop exit
PB: predicated region body
PF: predicated region fallthrough
CT: control target
= control target key end

     0   :  { %12 = vsyncpa [#allocation3], 0  ;;  %s793_s0 = inlined_call_operand.vmem [shape: f32[8,1], index: 0, kind: input, shape index: {}]   ;;  %s794_s1 = inlined_call_operand.vmem [shape: f32[1,128], index: 1, kind: input, shape index: {}]   ;;  %s795_s2 = inlined_call_operand.vmem [shape: f32[1,128], index: 2, kind: input, shape index: {}]   ;;  %s796_s3 = inlined_call_operand.hbm [shape: bf16[128,128], index: 3, kind: input, shape index: {}]   ;;  %s797_s4 = inlined_call_operand.vmem [shape: f32[1,128], index: 4, kind: input, shape index: {}]   ;;  %s798_s5 = inlined_call_operand.hbm [shape: bf16[128,128], index: 5, kind: input, shape index: {}]   ;;  %s799_s6 = inlined_call_operand.vmem [shape: f32[1,128], index: 6, kind: input, shape index: {}]   ;;  %s800_s7 = inlined_call_operand.hbm [shape: f32[8,128], index: 7, kind: output, shape index: {}]  }
   0x1   :  { %13 = vsyncpa [#allocation6], 0 }
   0x2   :  { %14 = vsyncpa [#allocation4], 0  ;;  %s649_s24 = smov [#allocation2]   ;;  %s577_s28 = scalar_lea.hbm %s796_s3, 1024 }
   0x3   :  { %s26_s25 = sshll.u32 %s649_s24, 4  ;;  %p578_p0 = scmp.ne.s32.totalorder %s796_s3, %s577_s28  ;;  %s27_s25 = int_to_ptr.vmem [resolvable:$true] %s26_s25 }
   0x4   :  { %p581_p1 = scmp.lt.u32.totalorder %s577_s28, %s796_s3 }
   0x6   :  { %p583_p2 = pnand %p581_p1, %p578_p0 }
   0x8   :  { %586 = shalt.err (!%p583_p2)
}
   0x9   :  { %s587_s10 = scalar_lea.vmem %s27_s25, 1024  ;;  %p592_p4 = scmp.lt.s32.totalorder %s27_s25, %s27_s25 }
   0xa   :  { %p588_p3 = scmp.ne.s32.totalorder %s27_s25, %s587_s10  ;;  %p593_p5 = scmp.lt.s32.totalorder %s587_s10, %s587_s10 }
   0xc   :  { %p594_p6 = por %p593_p5, %p592_p4 }
   0xe   :  { %p595_p7 = pnand %p594_p6, %p588_p3 }
  0x10   :  { %598 = shalt.err (!%p595_p7)
}
  0x11   :  { %s650_s11 = smov 64   ;;  %s651_s12 = smov 4  }
  0x12   :  { %32 = dma.hbm_to_vmem [thread:$0]  %s796_s3, 1024, %s27_s25, [#allocation3], %s650_s11, %s650_s11, %s651_s12  }
  0x13   :  { %s652_s15 = smov [#allocation5]   ;;  %s599_s19 = scalar_lea.hbm %s798_s5, 1024 }
  0x14   :  { %s40_s16 = sshll.u32 %s652_s15, 4  ;;  %p600_p8 = scmp.ne.s32.totalorder %s798_s5, %s599_s19  ;;  %s41_s16 = int_to_ptr.vmem [resolvable:$true] %s40_s16 }
  0x15   :  { %p603_p9 = scmp.lt.u32.totalorder %s599_s19, %s798_s5 }
  0x17   :  { %p605_p10 = pnand %p603_p9, %p600_p8 }
  0x19   :  { %608 = shalt.err (!%p605_p10)
}
  0x1a   :  { %s609_s24 = scalar_lea.vmem %s41_s16, 1024  ;;  %p614_p12 = scmp.lt.s32.totalorder %s41_s16, %s41_s16 }
  0x1b   :  { %p610_p11 = scmp.ne.s32.totalorder %s41_s16, %s609_s24  ;;  %p615_p13 = scmp.lt.s32.totalorder %s609_s24, %s609_s24 }
  0x1d   :  { %p616_p0 = por %p615_p13, %p614_p12 }
  0x1f   :  { %p617_p1 = pnand %p616_p0, %p610_p11 }
  0x21   :  { %620 = shalt.err (!%p617_p1)
}
  0x22   :  { %46 = dma.hbm_to_vmem [thread:$0]  %s798_s5, 1024, %s41_s16, [#allocation6], %s650_s11, %s650_s11, %s651_s12  }
  0x23   :  { %643 = dma.done.wait [#allocation3], 1024  }
  0x24   :  { %644 = vsyncadd [#allocation3], 4294966272 }
  0x25   :  { %645 = dma.done.wait [#allocation6], 1024  }
  0x26   :  { %646 = vsyncadd [#allocation6], 4294966272  ;;  %v653_v0 = vmov 0   ;;  %v56_v1 = vld [vmem:[%s793_s0] sm:$0xff]  ;;  %v654_v3 = vmov 0.0   ;;  %v554_v4 = vld [vmem:[#allocation2 + $0x8] sm:$0xff]  }
  0x27   :  { %552 = vset.pattern.permute.xlu0 %v653_v0  ;;  %v553_v2 = vld [vmem:[#allocation2] sm:$0xff]   ;;  %494 = vmatprep.subr.bf16.mxu0 %v654_v3  ;;  %v555_v5 = vld [vmem:[#allocation2 + $0x10] sm:$0xff]   ;;  %v556_v6 = vld [vmem:[#allocation2 + $0x18] sm:$0xff]   ;;  %vm655_vm0 = vmmov 0   ;;  %v656_v26 = vmov 683565275  }
  0x28   :  { %60 = vperm.xlu0 %552, %v56_v1   ;;  %514 = vmatprep.subr.bf16.mxu1 %v654_v3  ;;  %v557_v7 = vld [vmem:[#allocation2 + $0x20] sm:$0xff]   ;;  %v558_v8 = vld [vmem:[#allocation2 + $0x28] sm:$0xff]   ;;  %v559_v9 = vld [vmem:[#allocation2 + $0x30] sm:$0xff]   ;;  %v657_v28 = vmov 2475754826   ;;  %s662_s8 = smov [#allocation7]  }
  0x29   :  { %495 = vmatpush3.bf16.msra.mxu0 %v553_v2  ;;  %510 = vmatprep.mubr.msk.bf16.mxu0 %vm655_vm0, %v654_v3  ;;  %v560_v10 = vld [vmem:[#allocation2 + $0x38] sm:$0xff]   ;;  %v450_v11 = vld [vmem:[%s794_s1] ss:$0 sm:$0xff]  ;;  %v658_v31 = vmov 2131351028   ;;  %s440_s9 = sshll.u32 %s662_s8, 4  ;;  %s441_s9 = int_to_ptr.vmem [resolvable:$true] %s440_s9 }
  0x2a   :  { %496 = vmatprep.subr.bf16.mxu0 %v654_v3  ;;  %530 = vmatprep.mubr.msk.bf16.mxu1 %vm655_vm0, %v654_v3  ;;  %v451_v12 = vld [vmem:[%s795_s2] ss:$0 sm:$0xff]  ;;  %v659_v34 = vmov 2102212464   ;;  %v660_v37 = vmov 920167782   ;;  %p626_p3 = scmp.lt.s32.totalorder %s441_s9, %s441_s9 }
  0x2b   :  { %v661_v40 = vmov 1326507024   ;;  %s621_s10 = scalar_lea.vmem %s441_s9, 128 }
  0x2c   :  { %p622_p2 = scmp.ne.s32.totalorder %s441_s9, %s621_s10  ;;  %p627_p4 = scmp.lt.s32.totalorder %s621_s10, %s621_s10 }
  0x2d   :  { %497 = vmatpush3.bf16.msra.mxu0 %v554_v4 }
  0x2e   :  { %498 = vmatprep.subr.bf16.mxu0 %v654_v3  ;;  %p628_p5 = por %p627_p4, %p626_p3 }
  0x30   :  { %p629_p6 = pnand %p628_p5, %p622_p2 }
  0x31   :  { %499 = vmatpush3.bf16.msra.mxu0 %v555_v5 }
  0x32   :  { %500 = vmatprep.subr.bf16.mxu0 %v654_v3 }
  0x35   :  { %501 = vmatpush3.bf16.msra.mxu0 %v556_v6 }
  0x36   :  { %502 = vmatprep.subr.bf16.mxu0 %v654_v3 }
  0x39   :  { %503 = vmatpush3.bf16.msra.mxu0 %v557_v7 }
  0x3a   :  { %504 = vmatprep.subr.bf16.mxu0 %v654_v3 }
  0x3d   :  { %505 = vmatpush3.bf16.msra.mxu0 %v558_v8 }
  0x3e   :  { %506 = vmatprep.subr.bf16.mxu0 %v654_v3 }
  0x41   :  { %507 = vmatpush3.bf16.msra.mxu0 %v559_v9 }
  0x42   :  { %508 = vmatprep.subr.bf16.mxu0 %v654_v3 }
  0x45   :  { %509 = vmatpush3.bf16.msra.mxu0 %v560_v10 }
  0xa7   :  { %v61_v13 = vpop.permute.xlu0 %60 }
  0xa8   :  { %v69_v14 = vmul.f32 %v450_v11, %v61_v13 }
  0xaa   :  { %v747_v15 = vadd.f32 %v451_v12, %v69_v14 }
  0xac   :  { %v81_v16 = vand.u32 2139095040, %v747_v15  ;;  %v78_v20 = vand.u32 2147483647, %v747_v15  ;;  %vm80_vm8 = vcmp.lt.s32.totalorder %v747_v15, 0  ;;  %vm170_vm13 = vweird.f32 %v747_v15 }
  0xae   :  { %v82_v17 = vshrl.u32 %v81_v16, 23  ;;  %v85_v23 = vand.u32 8388607, %v78_v20  ;;  %vm79_vm9 = vcmp.le.f32.partialorder %v78_v20, 0.7853982 }
  0xb0   :  { %v452_v18 = vadd.s32 4294967169, %v82_v17  ;;  %v86_v42 = vor.u32 8388608, %v85_v23 }
  0xb2   :  { %v88_v19 = vadd.s32 1, %v452_v18  ;;  %v126_v56 = vshll.u32 %v86_v42, 8 }
  0xb4   :  { %vm89_vm1 = vcmp.gt.s32.totalorder %v88_v19, 0 }
  0xb5   :  { %v90_v21 = vsel %vm89_vm1, %v88_v19, 0 }
  0xb6   :  { %v92_v22 = vand.u32 31, %v90_v21  ;;  %v91_v25 = vshrl.u32 %v90_v21, 5 }
  0xb8   :  { %v93_v24 = vsub.s32 32, %v92_v22  ;;  %v95_v27 = vshll.u32 %v656_v26, %v92_v22  ;;  %v98_v29 = vshll.u32 %v657_v28, %v92_v22  ;;  %v101_v33 = vshll.u32 %v658_v31, %v92_v22 }
  0xb9   :  { %v104_v36 = vshll.u32 %v659_v34, %v92_v22  ;;  %v107_v39 = vshll.u32 %v660_v37, %v92_v22  ;;  %vm110_vm2 = vcmp.lt.s32.totalorder %v91_v25, 1  ;;  %vm113_vm3 = vcmp.lt.s32.totalorder %v91_v25, 4 }
  0xba   :  { %v96_v30 = vshrl.u32 %v657_v28, %v93_v24  ;;  %v99_v32 = vshrl.u32 %v658_v31, %v93_v24  ;;  %v102_v35 = vshrl.u32 %v659_v34, %v93_v24  ;;  %v105_v38 = vshrl.u32 %v660_v37, %v93_v24 }
  0xbb   :  { %v108_v41 = vshrl.u32 %v661_v40, %v93_v24  ;;  %v94_v51 = vshrl.u32 %v656_v26, %v93_v24  ;;  %vm112_vm4 = vcmp.lt.s32.totalorder %v91_v25, 3  ;;  %vm111_vm5 = vcmp.lt.s32.totalorder %v91_v25, 2 }
  0xbc   :  { %v97_v43 = vor.u32 %v96_v30, %v95_v27  ;;  %v100_v44 = vor.u32 %v99_v32, %v98_v29  ;;  %v103_v45 = vor.u32 %v102_v35, %v101_v33  ;;  %v106_v46 = vor.u32 %v105_v38, %v104_v36 }
  0xbd   :  { %v109_v47 = vor.u32 %v108_v41, %v107_v39 }
  0xbe   :  { %v115_v48 = vsel %vm113_vm3, %v103_v45, 2102212464  ;;  %v118_v49 = vsel %vm110_vm2, %v97_v43, %v100_v44  ;;  %v122_v50 = vsel %vm110_vm2, %v100_v44, %v103_v45  ;;  %v119_v52 = vsel %vm113_vm3, %v106_v46, 920167782 }
  0xbf   :  { %v123_v53 = vsel %vm113_vm3, %v109_v47, 1326507024  ;;  %v120_v54 = vsel %vm112_vm4, %v103_v45, %v119_v52  ;;  %v114_v57 = vsel %vm110_vm2, %v94_v51, %v97_v43  ;;  %v116_v58 = vsel %vm112_vm4, %v100_v44, %v115_v48  ;;  %v562_v47 = vld [vmem:[#allocation5 + $0x8] sm:$0xff]   ;;  %v563_v48 = vld [vmem:[#allocation5 + $0x10] sm:$0xff]   ;;  %v568_v52 = vld [vmem:[#allocation5 + $0x38] sm:$0xff]  }
  0xc0   :  { %v124_v55 = vsel %vm112_vm4, %v106_v46, %v123_v53  ;;  %v121_v59 = vsel %vm111_vm5, %v118_v49, %v120_v54  ;;  %v117_v1 = vsel %vm111_vm5, %v114_v57, %v116_v58  ;;  %v561_v46 = vld [vmem:[#allocation5] sm:$0xff]   ;;  %v564_v49 = vld [vmem:[#allocation5 + $0x18] sm:$0xff]   ;;  %v567_v51 = vld [vmem:[#allocation5 + $0x30] sm:$0xff]  }
  0xc1   :  { %v125_v60 = vsel %vm111_vm5, %v122_v50, %v124_v55  ;;  %v756_v63 = vmul.u32.u64.low %v126_v56, %v121_v59  ;;  %v757_v0 = vmul.u32.u64.high %v126_v56, %v121_v59, %v756_v63  ;;  %v133_v4 = vmul.u32 %v126_v56, %v117_v1  ;;  %515 = vmatpush3.bf16.msra.mxu1 %v561_v46  ;;  %v565_v50 = vld [vmem:[#allocation5 + $0x20] sm:$0xff]  }
  0xc2   :  { %v753_v61 = vmul.u32.u64.low %v126_v56, %v125_v60  ;;  %v754_v62 = vmul.u32.u64.high %v126_v56, %v125_v60, %v753_v61  ;;  %516 = vmatprep.subr.bf16.mxu1 %v654_v3  ;;  %v456_v53 = vld [vmem:[%s797_s4] ss:$0 sm:$0xff] }
  0xc3   :  { %v136_v2 = vadd.s32 1, %v757_v0 }
  0xc4   :  { %vm135_vm6 = vc.u32 %v754_v62, %v756_v63  ;;  %v134_v17 = vadd.s32 %v756_v63, %v754_v62 }
  0xc5   :  { %v137_v5 = vsel %vm135_vm6, %v136_v2, %v757_v0  ;;  %517 = vmatpush3.bf16.msra.mxu1 %v562_v47 }
  0xc6   :  { %v138_v6 = vadd.s32 %v137_v5, %v133_v4  ;;  %518 = vmatprep.subr.bf16.mxu1 %v654_v3 }
  0xc8   :  { %v139_v7 = vadd.s32 536870912, %v138_v6 }
  0xc9   :  { %519 = vmatpush3.bf16.msra.mxu1 %v563_v48 }
  0xca   :  { %v140_v8 = vshrl.u32 %v139_v7, 30  ;;  %520 = vmatprep.subr.bf16.mxu1 %v654_v3 }
  0xcc   :  { %v141_v9 = vshll.u32 %v140_v8, 30  ;;  %v164_v30 = vsub.s32 4, %v140_v8 }
  0xcd   :  { %521 = vmatpush3.bf16.msra.mxu1 %v564_v49 }
  0xce   :  { %v142_v10 = vsub.s32 %v138_v6, %v141_v9  ;;  %v165_v33 = vsel %vm80_vm8, %v164_v30, %v140_v8  ;;  %522 = vmatprep.subr.bf16.mxu1 %v654_v3 }
  0xcf   :  { %v167_v35 = vsel %vm79_vm9, 0, %v165_v33 }
  0xd0   :  { %v144_v11 = vsub.s32 0, %v142_v10  ;;  %v171_v36 = vadd.s32 3, %v167_v35 }
  0xd1   :  { %523 = vmatpush3.bf16.msra.mxu1 %v565_v50 }
  0xd2   :  { %v453_v12 = vmin.u32 %v144_v11, %v142_v10  ;;  %v172_v37 = vand.u32 3, %v171_v36  ;;  %524 = vmatprep.subr.bf16.mxu1 %v654_v3 }
  0xd4   :  { %v146_v13 = vclz %v453_v12  ;;  %vm177_vm10 = vcmp.eq.s32.totalorder %v172_v37, 2  ;;  %vm174_vm11 = vcmp.eq.s32.totalorder %v172_v37, 0  ;;  %vm173_vm12 = vcmp.lt.s32.totalorder %v172_v37, 2 }
  0xd6   :  { %v454_v14 = vadd.s32 4294967294, %v146_v13 }
  0xd8   :  { %vm455_vm7 = vcmp.lt.s32.totalorder %v454_v14, 0 }
  0xd9   :  { %v149_v16 = vsel %vm455_vm7, 0, %v454_v14 }
  0xda   :  { %v150_v18 = vsub.s32 32, %v149_v16  ;;  %v154_v19 = vsub.s32 4294967266, %v149_v16  ;;  %v151_v21 = vshll.u32 %v142_v10, %v149_v16 }
  0xdc   :  { %v152_v22 = vshrl.u32 %v134_v17, %v150_v18  ;;  %v155_v23 = vadd.s32 127, %v154_v19 }
  0xde   :  { %v153_v24 = vor.u32 %v152_v22, %v151_v21  ;;  %v156_v25 = vshll.u32 %v155_v23, 23  ;;  %v467_v23 = vld [vmem:[%s799_s6] ss:$0 sm:$0xff] }
  0xe0   :  { %v157_v26 = vor.u32 4788187, %v156_v25  ;;  %v160_v28 = vcvt.s32.f32 %v153_v24 }
  0xe2   :  { %v158_v27 = vand.u32 2147483647, %v157_v26 }
  0xe4   :  { %v161_v29 = vmul.f32 %v160_v28, %v158_v27 }
  0xe6   :  { %v162_v31 = vxor.u32 2147483648, %v161_v29 }
  0xe8   :  { %v163_v32 = vsel %vm80_vm8, %v162_v31, %v161_v29 }
  0xe9   :  { %v166_v34 = vsel %vm79_vm9, %v747_v15, %v163_v32  ;;  %v566_v15 = vld [vmem:[#allocation5 + $0x28] sm:$0xff]  }
  0xea   :  { %569 = vcosq.f32 %v166_v34  ;;  %525 = vmatpush3.bf16.msra.mxu1 %v566_v15 }
  0xeb   :  { %571 = vsinq.f32 %v166_v34  ;;  %526 = vmatprep.subr.bf16.mxu1 %v654_v3 }
  0xee   :  { %527 = vmatpush3.bf16.msra.mxu1 %v567_v51 }
  0xef   :  { %528 = vmatprep.subr.bf16.mxu1 %v654_v3 }
  0xf2   :  { %529 = vmatpush3.bf16.msra.mxu1 %v568_v52 }
  0xf4   :  { %v570_v38 = vpop.eup %569 }
  0xf5   :  { %v572_v39 = vpop.eup %571  ;;  %v178_v40 = vxor.u32 2147483648, %v570_v38 }
  0xf6   :  { %v175_v41 = vxor.u32 2147483648, %v572_v39 }
  0xf7   :  { %v179_v42 = vsel %vm177_vm10, %v178_v40, %v572_v39 }
  0xf8   :  { %v176_v43 = vsel %vm174_vm11, %v570_v38, %v175_v41 }
  0xf9   :  { %v180_v20 = vsel %vm173_vm12, %v176_v43, %v179_v42 }
  0xfa   :  { %v181_v44 = vsel %vm170_vm13, nan, %v180_v20 }
  0xfb   :  { %v182_v45 = vpack.c.bf16 %v181_v44, %v181_v44 }
  0xfd   :  { %511 = vmatmul.mubr.bf16.vlgmr.msra.gmra.mrb[0].mxu0 %v182_v45 }
 0x1d0   :  { %v288_v54 = vpop.f32.mrb[0].mxu0 }
 0x1d1   :  { %v289_v55 = vadd.f32 %v456_v53, %v288_v54  ;;  %v512_v56 = vpop.f32.mrb[1].mxu0 }
 0x1d2   :  { %v291_v57 = vpop.f32.mrb[2].mxu0 }
 0x1d3   :  { %v294_v58 = vmul.f32 0.70710677, %v289_v55  ;;  %v513_v59 = vpop.f32.mrb[3].mxu0  ;;  %v318_v18 = vmul.f32 0.5, %v289_v55 }
 0x1d5   :  { %v295_v60 = vand.u32 2147483647, %v294_v58  ;;  %vm315_vm14 = vcmp.ge.f32.partialorder %v294_v58, 0.0 }
 0x1d7   :  { %v296_v61 = vmul.f32 0.3275911, %v295_v60  ;;  %v309_v63 = vsub.f32 0.0, %v295_v60 }
 0x1d9   :  { %v297_v62 = vadd.f32 1.0, %v296_v61  ;;  %v310_v1 = vmul.f32 %v309_v63, %v295_v60 }
 0x1db   :  { %573 = vrcp.f32 %v297_v62  ;;  %v311_v4 = vmul.f32 1.442695, %v310_v1 }
 0x1dd   :  { %575 = vpow2.f32 %v311_v4 }
 0x1e5   :  { %v574_v0 = vpop.eup %573 }
 0x1e6   :  { %v300_v2 = vmul.f32 1.0614054, %v574_v0 }
 0x1e7   :  { %v576_v12 = vpop.eup %575 }
 0x1e8   :  { %v465_v3 = vadd.f32 -1.4531521, %v300_v2 }
 0x1ea   :  { %v302_v5 = vmul.f32 %v574_v0, %v465_v3 }
 0x1ec   :  { %v303_v6 = vadd.f32 1.4214138, %v302_v5 }
 0x1ee   :  { %v304_v7 = vmul.f32 %v574_v0, %v303_v6 }
 0x1f0   :  { %v466_v8 = vadd.f32 -0.28449672, %v304_v7 }
 0x1f2   :  { %v306_v9 = vmul.f32 %v574_v0, %v466_v8 }
 0x1f4   :  { %v307_v10 = vadd.f32 0.2548296, %v306_v9 }
 0x1f6   :  { %v308_v11 = vmul.f32 %v574_v0, %v307_v10 }
 0x1f8   :  { %v313_v13 = vmul.f32 %v576_v12, %v308_v11 }
 0x1fa   :  { %v314_v14 = vsub.f32 1.0, %v313_v13 }
 0x1fc   :  { %v316_v16 = vsub.f32 0.0, %v314_v14 }
 0x1fe   :  { %v317_v17 = vsel %vm315_vm14, %v314_v14, %v316_v16 }
 0x1ff   :  { %v319_v19 = vadd.f32 1.0, %v317_v17 }
 0x201   :  { %v320_v21 = vmul.f32 %v319_v19, %v318_v18 }
 0x203   :  { %v321_v22 = vpack.c.bf16 %v320_v21, %v320_v21 }
 0x205   :  { %531 = vmatmul.mubr.bf16.vlgmr.msra.gmra.mrb[0].mxu1 %v321_v22 }
 0x2d8   :  { %v427_v24 = vpop.f32.mrb[0].mxu1 }
 0x2d9   :  { %v428_v25 = vadd.f32 %v467_v23, %v427_v24  ;;  %v532_v26 = vpop.f32.mrb[1].mxu1 }
 0x2da   :  { %v430_v27 = vpop.f32.mrb[2].mxu1 }
 0x2db   :  { %433 = vst [vmem:[#allocation7] sm:$0xff] %v428_v25  ;;  %v533_v28 = vpop.f32.mrb[3].mxu1 }
 0x2dc   :  { %632 = shalt.err (!%p629_p6)
}
 0x2dd   :  { %s633_s6 = scalar_lea.hbm %s800_s7, 128 }
 0x2de   :  { %p634_p7 = scmp.ne.s32.totalorder %s800_s7, %s633_s6  ;;  %p637_p8 = scmp.lt.u32.totalorder %s633_s6, %s800_s7 }
 0x2e0   :  { %p639_p9 = pnand %p637_p8, %p634_p7 }
 0x2e2   :  { %642 = shalt.err (!%p639_p9)
}
 0x2e3   :  { %443 = dma.vmem_to_hbm [thread:$0]  %s441_s9, 128, %s800_s7, [#allocation4]  }
 0x2e4   :  { %647 = dma.done.wait [#allocation4], 128  }
 0x2e5   :  { %648 = vsyncadd [#allocation4], 4294967168 }
 0x2e6   :  { %447 = vsyncpa [#allocation3], 1 }
 0x2e7   :  { %448 = vsyncpa [#allocation6], 1 }
 0x2e8   :  { %449 = vsyncpa [#allocation4], 1 }

</bundles_post_ra>
